<compile_context>
chip_gen: v6e
topology: v6e:2x2x1
jax: 0.10.0
libtpu: 0.0.40
codegen_flags: <defaults>
</compile_context>

<pallas_src>
import math
import functools

import jax
import jax.numpy as jnp
from jax import lax
from jax.experimental import pallas as pl
from jax.experimental.pallas import tpu as pltpu


def _round_up(n, m):
    return ((n + m - 1) // m) * m


def _layernorm(x, gamma, beta, eps=1e-5):
    # Variance as E[x^2] - mu^2: the two reductions are independent and can
    # issue back-to-back into the XLU FIFO (shorter critical path than the
    # serialized mean((x - mu)^2) form).
    n = x.shape[-1]
    inv_n = 1.0 / n
    s1 = jnp.sum(x, axis=-1, keepdims=True)
    s2 = jnp.sum(x * x, axis=-1, keepdims=True)
    mu = s1 * inv_n
    var = jnp.maximum(s2 * inv_n - mu * mu, 0.0)
    return (x - mu) * lax.rsqrt(var + eps) * gamma + beta


def _gelu_exact(x):
    # nn.GELU() default is the exact erf formulation.
    return 0.5 * x * (1.0 + lax.erf(x * (1.0 / math.sqrt(2.0))))


def _gelu_tanh(x):
    # tanh-approximate GELU: routes the transcendental to the EUP slot
    # (useful when the VALU slot saturates at large tb); changes numerics.
    return jax.nn.gelu(x, approximate=True)


def decoder_kernel(x_ref, w1_ref, w2_ref, w3_ref, vec_ref, o_ref, *,
                   h2, h4, out_pad, matmul_dtype, gelu_approx):
    x = x_ref[...].astype(jnp.float32)

    # Packed per-feature vectors (grid-invariant, one DMA'd (8, W) tile).
    vec = vec_ref[...]
    b1, g1, be1 = vec[0:1, :h2], vec[1:2, :h2], vec[2:3, :h2]
    b2, g2, be2 = vec[3:4, :h4], vec[4:5, :h4], vec[5:6, :h4]
    b3 = vec[6:7, :out_pad]

    def dot(a, w_ref):
        # Optional bf16 operands (v6e/v7x MXU native path); accumulate in f32.
        return jnp.dot(a.astype(matmul_dtype), w_ref[...].astype(matmul_dtype),
                       preferred_element_type=jnp.float32)

    gelu = _gelu_tanh if gelu_approx else _gelu_exact

    # Linear 1 + LayerNorm + GELU
    h = dot(x, w1_ref) + b1
    h = _layernorm(h, g1, be1)
    h = gelu(h)

    # Linear 2 + LayerNorm + GELU
    h = dot(h, w2_ref) + b2
    h = _layernorm(h, g2, be2)
    h = gelu(h)

    # Linear 3 + Sigmoid (into a lane-dense, 128-padded output slab).
    y = dot(h, w3_ref) + b3
    o_ref[...] = jax.nn.sigmoid(y).astype(o_ref.dtype)


def spatiotemporal_decoder(embeddings, params, *, tb=512,
                           matmul_dtype=jnp.float32, gelu_approx=False):
    """embeddings: (B, D) float32 -> (B, output_dim) float32 in [0, 1]."""
    B, D = embeddings.shape
    (w1, b1, g1, be1, w2, b2, g2, be2, w3, b3) = params
    h2 = w1.shape[1]
    h4 = w2.shape[1]
    out_dim = w3.shape[1]

    # ---- lane-dense output padding -------------------------------------
    out_pad = _round_up(out_dim, 128)
    w3p = jnp.pad(w3, ((0, 0), (0, out_pad - out_dim)))

    # ---- pack the tiny per-feature vectors into one (8, W) array --------
    vec_w = max(_round_up(h2, 128), out_pad)

    def row(v):
        v = jnp.asarray(v, jnp.float32).reshape(1, -1)
        return jnp.pad(v, ((0, 0), (0, vec_w - v.shape[1])))

    vec_pack = jnp.concatenate(
        [row(b1), row(g1), row(be1),
         row(b2), row(g2), row(be2),
         row(b3), jnp.zeros((1, vec_w), jnp.float32)], axis=0)

    # ---- batch tiling ----------------------------------------------------
    # Big tiles amortize the fixed per-grid-step overhead; keep >= 2 steps
    # when possible so the "parallel" axis can be split over v7x's 2 TCs.
    Bp8 = _round_up(B, 8)
    tb = max(8, min(_round_up(tb, 8), Bp8))
    if Bp8 // tb < 2 and Bp8 >= 16:
        tb = max(8, ((Bp8 // 2) // 8) * 8)
    Bp = _round_up(Bp8, tb)

    x_p = embeddings
    if Bp != B:
        x_p = jnp.pad(embeddings, ((0, Bp - B), (0, 0)))

    grid = (Bp // tb,)
    kern = functools.partial(decoder_kernel, h2=h2, h4=h4, out_pad=out_pad,
                             matmul_dtype=matmul_dtype, gelu_approx=gelu_approx)

    def invariant(shape):
        nrank = len(shape)
        return pl.BlockSpec(shape, lambda i: (0,) * nrank)

    out = pl.pallas_call(
        kern,
        out_shape=jax.ShapeDtypeStruct((Bp, out_pad), embeddings.dtype),
        grid_spec=pltpu.PrefetchScalarGridSpec(
            num_scalar_prefetch=0,
            grid=grid,
            in_specs=[
                pl.BlockSpec((tb, D), lambda i: (i, 0)),   # embeddings tile
                invariant(w1.shape),                       # (D,  h2)
                invariant(w2.shape),                       # (h2, h4)
                invariant(w3p.shape),                      # (h4, out_pad)
                invariant(vec_pack.shape),                 # (8,  vec_w)
            ],
            out_specs=pl.BlockSpec((tb, out_pad), lambda i: (i, 0)),
        ),
        compiler_params=pltpu.CompilerParams(
            dimension_semantics=("parallel",)),
    )(x_p, w1, w2, w3p, vec_pack)

    return out[:B, :out_dim]


def init_params(key, hidden_dim, output_dim):
    """Deterministic synthetic parameters matching the PyTorch module shapes."""
    h2 = hidden_dim // 2
    h4 = hidden_dim // 4
    ks = jax.random.split(key, 6)

    def lin(kw, kb, fan_in, fan_out):
        bound = 1.0 / math.sqrt(fan_in)
        w = jax.random.uniform(kw, (fan_in, fan_out), jnp.float32, -bound, bound)
        b = jax.random.uniform(kb, (1, fan_out), jnp.float32, -bound, bound)
        return w, b

    w1, b1 = lin(ks[0], ks[1], hidden_dim, h2)
    w2, b2 = lin(ks[2], ks[3], h2, h4)
    w3, b3 = lin(ks[4], ks[5], h4, output_dim)

    g1, be1 = jnp.ones((1, h2), jnp.float32), jnp.zeros((1, h2), jnp.float32)
    g2, be2 = jnp.ones((1, h4), jnp.float32), jnp.zeros((1, h4), jnp.float32)
    return (w1, b1, g1, be1, w2, b2, g2, be2, w3, b3)


def reference(embeddings, params):
    """Pure-JAX reference matching the PyTorch module (exact GELU, eps=1e-5)."""
    (w1, b1, g1, be1, w2, b2, g2, be2, w3, b3) = params

    def ln(x, gamma, beta, eps=1e-5):
        mu = jnp.mean(x, axis=-1, keepdims=True)
        var = jnp.mean((x - mu) ** 2, axis=-1, keepdims=True)
        return (x - mu) * lax.rsqrt(var + eps) * gamma + beta

    h = embeddings @ w1 + b1
    h = _gelu_exact(ln(h, g1, be1))
    h = h @ w2 + b2
    h = _gelu_exact(ln(h, g2, be2))
    y = h @ w3 + b3
    return jax.nn.sigmoid(y)


if __name__ == "__main__":
    hidden_dim = 32      # config.hidden_dim
    output_dim = 3       # 'spatial' -> (x, y, z)
    B = 16               # batch

    key = jax.random.PRNGKey(0)
    k_x, k_p = jax.random.split(key)
    embeddings = jax.random.normal(k_x, (B, hidden_dim), jnp.float32)
    params = init_params(k_p, hidden_dim, output_dim)
    ref = reference(embeddings, params)

    # Default (f32 matmul, exact-erf GELU): bit-matches the PyTorch semantics.
    coords = spatiotemporal_decoder(embeddings, params)
    coords = jax.block_until_ready(coords)
    assert coords.shape == (B, output_dim)
    assert bool(jnp.all((coords >= 0.0) & (coords <= 1.0)))
    assert bool(jnp.allclose(coords, ref, atol=5e-5, rtol=5e-5))

    # bf16-matmul path (v6e/v7x MXU-native operands, f32 accumulation):
    # intentionally looser tolerance per the perf review.
    coords_bf16 = spatiotemporal_decoder(embeddings, params,
                                         matmul_dtype=jnp.bfloat16)
    coords_bf16 = jax.block_until_ready(coords_bf16)
    assert bool(jnp.allclose(coords_bf16, ref, atol=5e-2, rtol=0.0))

    # Ragged batch (exercises the pad-to-tile path in the wrapper).
    Br = 13
    coords_r = spatiotemporal_decoder(embeddings[:Br], params)
    coords_r = jax.block_until_ready(coords_r)
    assert coords_r.shape == (Br, output_dim)
    assert bool(jnp.allclose(coords_r, ref[:Br], atol=5e-5, rtol=5e-5))

    print("KERNEL_OK")
</pallas_src>

<mosaic_0001>
module attributes {stable_mosaic.version = 11 : i64} {
  func.func @decoder_kernel(%arg0: i32, %arg1: memref<8x32xf32, #tpu.memory_space<vmem>>, %arg2: memref<32x16xf32, #tpu.memory_space<vmem>>, %arg3: memref<16x8xf32, #tpu.memory_space<vmem>>, %arg4: memref<8x128xf32, #tpu.memory_space<vmem>>, %arg5: memref<8x128xf32, #tpu.memory_space<vmem>>, %arg6: memref<8x128xf32, #tpu.memory_space<vmem>>) attributes {dimension_semantics = [#tpu.dimension_semantics<parallel>], iteration_bounds = array<i64: 2>, scalar_prefetch = 0 : i64, scratch_operands = 0 : i64, tpu.core_type = #tpu.core_type<tc>, window_params = [{transform_indices = @transform_0, window_bounds = array<i64: 8, 32>}, {pipeline_mode = #tpu.pipeline_mode<synchronous>, transform_indices = @transform_1, window_bounds = array<i64: 32, 16>}, {pipeline_mode = #tpu.pipeline_mode<synchronous>, transform_indices = @transform_2, window_bounds = array<i64: 16, 8>}, {pipeline_mode = #tpu.pipeline_mode<synchronous>, transform_indices = @transform_3, window_bounds = array<i64: 8, 128>}, {pipeline_mode = #tpu.pipeline_mode<synchronous>, transform_indices = @transform_4, window_bounds = array<i64: 8, 128>}, {transform_indices = @transform_5, window_bounds = array<i64: 8, 128>}]} {
    %c0 = arith.constant 0 : index
    %c0_0 = arith.constant 0 : index
    %0 = vector.load %arg1[%c0, %c0_0] : memref<8x32xf32, #tpu.memory_space<vmem>>, vector<8x32xf32>
    %c0_1 = arith.constant 0 : index
    %c0_2 = arith.constant 0 : index
    %1 = vector.load %arg5[%c0_1, %c0_2] : memref<8x128xf32, #tpu.memory_space<vmem>>, vector<8x128xf32>
    %2 = vector.extract_strided_slice %1 {offsets = [0, 0], sizes = [1, 16], strides = [1, 1]} : vector<8x128xf32> to vector<1x16xf32>
    %3 = vector.extract_strided_slice %1 {offsets = [1, 0], sizes = [1, 16], strides = [1, 1]} : vector<8x128xf32> to vector<1x16xf32>
    %4 = vector.extract_strided_slice %1 {offsets = [2, 0], sizes = [1, 16], strides = [1, 1]} : vector<8x128xf32> to vector<1x16xf32>
    %5 = vector.extract_strided_slice %1 {offsets = [3, 0], sizes = [1, 8], strides = [1, 1]} : vector<8x128xf32> to vector<1x8xf32>
    %6 = vector.extract_strided_slice %1 {offsets = [4, 0], sizes = [1, 8], strides = [1, 1]} : vector<8x128xf32> to vector<1x8xf32>
    %7 = vector.extract_strided_slice %1 {offsets = [5, 0], sizes = [1, 8], strides = [1, 1]} : vector<8x128xf32> to vector<1x8xf32>
    %8 = vector.extract_strided_slice %1 {offsets = [6, 0], sizes = [1, 128], strides = [1, 1]} : vector<8x128xf32> to vector<1x128xf32>
    %c0_3 = arith.constant 0 : index
    %c0_4 = arith.constant 0 : index
    %9 = vector.load %arg2[%c0_3, %c0_4] : memref<32x16xf32, #tpu.memory_space<vmem>>, vector<32x16xf32>
    %cst = arith.constant dense<0.000000e+00> : vector<8x16xf32>
    %10 = tpu.matmul %0, %9, %cst {dimension_numbers = #tpu.dot_dimension_numbers<[1], [0], [0], [1], [0, 0, 1, 1], [], []>} : vector<8x32xf32>, vector<32x16xf32>, vector<8x16xf32> -> vector<8x16xf32>
    %11 = vector.broadcast %2 : vector<1x16xf32> to vector<8x16xf32>
    %12 = arith.addf %10, %11 : vector<8x16xf32>
    %cst_5 = arith.constant dense<0.000000e+00> : vector<8xf32>
    %13 = vector.multi_reduction <add>, %12, %cst_5 [1] : vector<8x16xf32> to vector<8xf32>
    %14 = vector.shape_cast %13 : vector<8xf32> to vector<8x1xf32>
    %15 = arith.mulf %12, %12 : vector<8x16xf32>
    %cst_6 = arith.constant dense<0.000000e+00> : vector<8xf32>
    %16 = vector.multi_reduction <add>, %15, %cst_6 [1] : vector<8x16xf32> to vector<8xf32>
    %17 = vector.shape_cast %16 : vector<8xf32> to vector<8x1xf32>
    %cst_7 = arith.constant 6.250000e-02 : f32
    %18 = vector.broadcast %cst_7 : f32 to vector<8x1xf32>
    %19 = arith.mulf %14, %18 : vector<8x1xf32>
    %cst_8 = arith.constant 6.250000e-02 : f32
    %20 = vector.broadcast %cst_8 : f32 to vector<8x1xf32>
    %21 = arith.mulf %17, %20 : vector<8x1xf32>
    %22 = arith.mulf %19, %19 : vector<8x1xf32>
    %23 = arith.subf %21, %22 : vector<8x1xf32>
    %cst_9 = arith.constant 0.000000e+00 : f32
    %24 = vector.broadcast %cst_9 : f32 to vector<8x1xf32>
    %25 = arith.maximumf %23, %24 : vector<8x1xf32>
    %26 = vector.broadcast %19 : vector<8x1xf32> to vector<8x16xf32>
    %27 = arith.subf %12, %26 : vector<8x16xf32>
    %cst_10 = arith.constant 9.99999974E-6 : f32
    %28 = vector.broadcast %cst_10 : f32 to vector<8x1xf32>
    %29 = arith.addf %25, %28 : vector<8x1xf32>
    %30 = math.rsqrt %29 : vector<8x1xf32>
    %31 = vector.broadcast %30 : vector<8x1xf32> to vector<8x16xf32>
    %32 = arith.mulf %27, %31 : vector<8x16xf32>
    %33 = vector.broadcast %3 : vector<1x16xf32> to vector<8x16xf32>
    %34 = arith.mulf %32, %33 : vector<8x16xf32>
    %35 = vector.broadcast %4 : vector<1x16xf32> to vector<8x16xf32>
    %36 = arith.addf %34, %35 : vector<8x16xf32>
    %cst_11 = arith.constant 5.000000e-01 : f32
    %37 = vector.broadcast %cst_11 : f32 to vector<8x16xf32>
    %38 = arith.mulf %37, %36 : vector<8x16xf32>
    %cst_12 = arith.constant 0.707106769 : f32
    %39 = vector.broadcast %cst_12 : f32 to vector<8x16xf32>
    %40 = arith.mulf %36, %39 : vector<8x16xf32>
    %41 = math.erf %40 : vector<8x16xf32>
    %cst_13 = arith.constant 1.000000e+00 : f32
    %42 = vector.broadcast %cst_13 : f32 to vector<8x16xf32>
    %43 = arith.addf %42, %41 : vector<8x16xf32>
    %44 = arith.mulf %38, %43 : vector<8x16xf32>
    %c0_14 = arith.constant 0 : index
    %c0_15 = arith.constant 0 : index
    %45 = vector.load %arg3[%c0_14, %c0_15] : memref<16x8xf32, #tpu.memory_space<vmem>>, vector<16x8xf32>
    %cst_16 = arith.constant dense<0.000000e+00> : vector<8x8xf32>
    %46 = tpu.matmul %44, %45, %cst_16 {dimension_numbers = #tpu.dot_dimension_numbers<[1], [0], [0], [1], [0, 0, 1, 1], [], []>} : vector<8x16xf32>, vector<16x8xf32>, vector<8x8xf32> -> vector<8x8xf32>
    %47 = vector.broadcast %5 : vector<1x8xf32> to vector<8x8xf32>
    %48 = arith.addf %46, %47 : vector<8x8xf32>
    %cst_17 = arith.constant dense<0.000000e+00> : vector<8xf32>
    %49 = vector.multi_reduction <add>, %48, %cst_17 [1] : vector<8x8xf32> to vector<8xf32>
    %50 = vector.shape_cast %49 : vector<8xf32> to vector<8x1xf32>
    %51 = arith.mulf %48, %48 : vector<8x8xf32>
    %cst_18 = arith.constant dense<0.000000e+00> : vector<8xf32>
    %52 = vector.multi_reduction <add>, %51, %cst_18 [1] : vector<8x8xf32> to vector<8xf32>
    %53 = vector.shape_cast %52 : vector<8xf32> to vector<8x1xf32>
    %cst_19 = arith.constant 1.250000e-01 : f32
    %54 = vector.broadcast %cst_19 : f32 to vector<8x1xf32>
    %55 = arith.mulf %50, %54 : vector<8x1xf32>
    %cst_20 = arith.constant 1.250000e-01 : f32
    %56 = vector.broadcast %cst_20 : f32 to vector<8x1xf32>
    %57 = arith.mulf %53, %56 : vector<8x1xf32>
    %58 = arith.mulf %55, %55 : vector<8x1xf32>
    %59 = arith.subf %57, %58 : vector<8x1xf32>
    %cst_21 = arith.constant 0.000000e+00 : f32
    %60 = vector.broadcast %cst_21 : f32 to vector<8x1xf32>
    %61 = arith.maximumf %59, %60 : vector<8x1xf32>
    %62 = vector.broadcast %55 : vector<8x1xf32> to vector<8x8xf32>
    %63 = arith.subf %48, %62 : vector<8x8xf32>
    %cst_22 = arith.constant 9.99999974E-6 : f32
    %64 = vector.broadcast %cst_22 : f32 to vector<8x1xf32>
    %65 = arith.addf %61, %64 : vector<8x1xf32>
    %66 = math.rsqrt %65 : vector<8x1xf32>
    %67 = vector.broadcast %66 : vector<8x1xf32> to vector<8x8xf32>
    %68 = arith.mulf %63, %67 : vector<8x8xf32>
    %69 = vector.broadcast %6 : vector<1x8xf32> to vector<8x8xf32>
    %70 = arith.mulf %68, %69 : vector<8x8xf32>
    %71 = vector.broadcast %7 : vector<1x8xf32> to vector<8x8xf32>
    %72 = arith.addf %70, %71 : vector<8x8xf32>
    %cst_23 = arith.constant 5.000000e-01 : f32
    %73 = vector.broadcast %cst_23 : f32 to vector<8x8xf32>
    %74 = arith.mulf %73, %72 : vector<8x8xf32>
    %cst_24 = arith.constant 0.707106769 : f32
    %75 = vector.broadcast %cst_24 : f32 to vector<8x8xf32>
    %76 = arith.mulf %72, %75 : vector<8x8xf32>
    %77 = math.erf %76 : vector<8x8xf32>
    %cst_25 = arith.constant 1.000000e+00 : f32
    %78 = vector.broadcast %cst_25 : f32 to vector<8x8xf32>
    %79 = arith.addf %78, %77 : vector<8x8xf32>
    %80 = arith.mulf %74, %79 : vector<8x8xf32>
    %c0_26 = arith.constant 0 : index
    %c0_27 = arith.constant 0 : index
    %81 = vector.load %arg4[%c0_26, %c0_27] : memref<8x128xf32, #tpu.memory_space<vmem>>, vector<8x128xf32>
    %cst_28 = arith.constant dense<0.000000e+00> : vector<8x128xf32>
    %82 = tpu.matmul %80, %81, %cst_28 {dimension_numbers = #tpu.dot_dimension_numbers<[1], [0], [0], [1], [0, 0, 1, 1], [], []>} : vector<8x8xf32>, vector<8x128xf32>, vector<8x128xf32> -> vector<8x128xf32>
    %83 = vector.broadcast %8 : vector<1x128xf32> to vector<8x128xf32>
    %84 = arith.addf %82, %83 : vector<8x128xf32>
    %85 = arith.negf %84 : vector<8x128xf32>
    %86 = math.exp %85 : vector<8x128xf32>
    %cst_29 = arith.constant 1.000000e+00 : f32
    %87 = vector.broadcast %cst_29 : f32 to vector<8x128xf32>
    %88 = arith.addf %87, %86 : vector<8x128xf32>
    %89 = arith.divf %87, %88 : vector<8x128xf32>
    %c0_30 = arith.constant 0 : index
    %c0_31 = arith.constant 0 : index
    %90 = vector.load %arg6[%c0_30, %c0_31] : memref<8x128xf32, #tpu.memory_space<vmem>>, vector<8x128xf32>
    tpu.vector_store %arg6[%c0_30, %c0_31], %89 {strides = array<i32>} : memref<8x128xf32, #tpu.memory_space<vmem>>, vector<8x128xf32>,
    return
  }
  func.func @transform_0(%arg0: i32) -> (i32, i32) {
    %c0_i32 = arith.constant 0 : i32
    %c0_i32_0 = arith.constant 0 : i32
    return %arg0, %c0_i32 : i32, i32
  }
  func.func @transform_1(%arg0: i32) -> (i32, i32) {
    %c0_i32 = arith.constant 0 : i32
    %c0_i32_0 = arith.constant 0 : i32
    %c0_i32_1 = arith.constant 0 : i32
    return %c0_i32, %c0_i32_0 : i32, i32
  }
  func.func @transform_2(%arg0: i32) -> (i32, i32) {
    %c0_i32 = arith.constant 0 : i32
    %c0_i32_0 = arith.constant 0 : i32
    %c0_i32_1 = arith.constant 0 : i32
    return %c0_i32, %c0_i32_0 : i32, i32
  }
  func.func @transform_3(%arg0: i32) -> (i32, i32) {
    %c0_i32 = arith.constant 0 : i32
    %c0_i32_0 = arith.constant 0 : i32
    %c0_i32_1 = arith.constant 0 : i32
    return %c0_i32, %c0_i32_0 : i32, i32
  }
  func.func @transform_4(%arg0: i32) -> (i32, i32) {
    %c0_i32 = arith.constant 0 : i32
    %c0_i32_0 = arith.constant 0 : i32
    %c0_i32_1 = arith.constant 0 : i32
    return %c0_i32, %c0_i32_0 : i32, i32
  }
  func.func @transform_5(%arg0: i32) -> (i32, i32) {
    %c0_i32 = arith.constant 0 : i32
    %c0_i32_0 = arith.constant 0 : i32
    return %arg0, %c0_i32 : i32, i32
  }
}

</mosaic_0001>

<bundles_post_ra>
// kernel: tpu_custom_call.1
= control target key start
LH: loop header
LB: loop body
LE: loop exit
PB: predicated region body
PF: predicated region fallthrough
CT: control target
= control target key end

     0   :  { %10 = vsyncpa [#allocation3], 0  ;;  %s954_s0 = inlined_call_operand.vmem [shape: f32[16,32], index: 0, kind: input, shape index: {}]   ;;  %s955_s1 = inlined_call_operand.vmem [shape: f32[32,16], index: 1, kind: input, shape index: {}]   ;;  %s956_s2 = inlined_call_operand.vmem [shape: f32[16,8], index: 2, kind: input, shape index: {}]   ;;  %s957_s3 = inlined_call_operand.vmem [shape: f32[8,128], index: 3, kind: input, shape index: {}]   ;;  %s958_s4 = inlined_call_operand.vmem [shape: f32[8,128], index: 4, kind: input, shape index: {}]   ;;  %s959_s5 = inlined_call_operand.hbm [shape: f32[16,128], index: 5, kind: output, shape index: {}]  }
   0x1   :  { %12 = vsyncpa [#allocation3 + $0x1], 0  ;;  %s800_s18 = smov 0   ;;  %s802_s19 = smov 0  }
   0x2   :  { %s804_s20 = smov 0   ;;  %s806_s21 = smov 0  }
   0x3 LB: > { %s821_s22 = sadd.s32 4294967295, %s765_s21   ;;  %s605_s23 = sadd.s32 4294967294, %s765_s21   ;;  %s765_s21 = sphi %s806_s21, %s965_s21   ;;  %s761_s20 = sphi %s804_s20, %s964_s20   ;;  %s757_s19 = sphi %s802_s19, %s963_s19   ;;  %s753_s18 = sphi %s800_s18, %s962_s18  }
   0x4   : > { %s825_s24 = sadd.s32 1, %s765_s21   ;;  %s135_s25 = sadd.s32 1, %s761_s20 }
   0x5   : > { %s132_s26 = ssub.s32 %s765_s21, %s825_s24  ;;  %p145_p0 = scmp.ne.s32.totalorder %s761_s20, %s757_s19 }
   0x6   : > { %p133_p1 = scmp.eq.s32.totalorder %s132_s26, 0  ;;  %p146_p2 = scmp.eq.s32.totalorder %s821_s22, 1 }
   0x7   : > { %p151_p3 = scmp.ne.s32.totalorder %s757_s19, %s753_s18  ;;  %p152_p4 = scmp.eq.s32.totalorder %s605_s23, 1 }
   0x8   : > { %s836_s27 = scalar_select %p133_p1, %s761_s20, %s135_s25  }
   0x9   : > { %p838_p5 = por %p146_p2, %p145_p0  ;;  %p842_p6 = por %p152_p4, %p151_p3 }
   0xa   : > { %p608_p7 = scmp.ge.s32.totalorder %s765_s21, 1  ;;  %p189_p8 = scmp.lt.s32.totalorder %s765_s21, 3 }
   0xc   : > { %p190_p9 = pnand %p608_p7, %p189_p8 }
   0xd   : > { %p216_p10 = scmp.lt.s32.totalorder (!%p190_p9), %s821_s22, 1  ;;  %s213_s10 = sand.u32 (!%p190_p9), 1, %s757_s19  }
   0xe   : > { %193 = sbr.rel (%p190_p9) target bundleno = 1040 (0x410), region = 40  ;;  %s609_s11 = sshll.u32 (!%p190_p9), %s213_s10, 3 }
   0xf   : > { %s215_s13 = scalar_lea.vmem (!%p190_p9), [#allocation2], %s609_s11  ;;  %s533_s23 = scalar_lea.sflag (!%p190_p9), [#allocation3], %s213_s10 }
  0x10   : > { %s546_s14 = sshll.u32 (!%p190_p9), %s215_s13, 4  ;;  %s769_s26 = smov (!%p190_p9), [#allocation2]   ;;  %s547_s14 = int_to_ptr.vmem [resolvable:$true] %s546_s14 }
  0x11   : > { %s705_s25 = scalar_lea.vmem (!%p190_p9), %s547_s14, 128  ;;  %s709_s30 = sshll.u32 (!%p190_p9), %s769_s26, 4  ;;  %s710_s30 = int_to_ptr.vmem [resolvable:$false] %s709_s30 }
  0x12   : > { %p706_p11 = scmp.ne.s32.totalorder (!%p190_p9), %s547_s14, %s705_s25  ;;  %p712_p0 = scmp.lt.s32.totalorder (!%p190_p9), %s547_s14, %s710_s30 }
  0x13   : > { %v225_v0 = vld [vmem:[%s955_s1 + $0x18] sm:$0xff]  ;;  %v767_v1 = vmov 0.0   ;;  %v224_v2 = vld [vmem:[%s955_s1 + $0x10] sm:$0xff]  ;;  %vm768_vm0 = vmmov 0   ;;  %s217_s9 = scalar_select %p216_p10, %s821_s22, 1  ;;  %v223_v3 = vld [vmem:[%s955_s1 + $0x8] sm:$0xff]  ;;  %v226_v6 = vlaneseq }
  0x14   : > { %629 = vmatprep.subr.mxu0 %v767_v1  ;;  %637 = vmatprep.mubr.msk.f32.mxu0 %vm768_vm0, %v767_v1  ;;  %v222_v4 = vld [vmem:[%s955_s1] sm:$0xff]  ;;  %vm230_vm1 = vcmask 261120   ;;  %vm304_vm2 = vcmask 130048   ;;  %v337_v17 = vld [vmem:[%s956_s2 + $0x8] sm:$0xff]  ;;  %vm415_vm3 = vcmask 64512   ;;  %p707_p12 = pnand %p706_p11, %p838_p5 }
  0x15   : > { %630 = vmatpush3.msra.mxu0 %v225_v0  ;;  %640 = vmatprep.subr.mxu1 %v767_v1  ;;  %s610_s12 = sshll.u32 %s217_s9, 3  ;;  %v874_v7 = vshrl.u32 %v226_v6, 7  ;;  %v880_v9 = vld [vmem:[%s958_s4] sm:$0xff] }
  0x16   : > { %631 = vmatprep.subr.mxu0 %v767_v1  ;;  %644 = vmatprep.mubr.msk.f32.mxu1 %vm768_vm0, %v767_v1  ;;  %s219_s17 = scalar_lea.vmem %s954_s0, %s610_s12  ;;  %v336_v18 = vld [vmem:[%s956_s2] sm:$0xff]  ;;  %s616_s12 = sshll.u32 %s821_s22, 7 }
  0x17   : > { %632 = vmatpush3.msra.mxu0 %v224_v2  ;;  %v220_v5 = vld [vmem:[%s219_s17] sm:$0xff]  ;;  %v228_v8 = vsub.s32 0, %v874_v7  ;;  %641 = vmatpush3.msra.mxu1 %v337_v17  ;;  %v323_v27 = vsub.s32 1, %v874_v7  ;;  %v328_v28 = vsub.s32 2, %v874_v7  ;;  %v340_v41 = vsub.s32 3, %v874_v7  ;;  %s919_s17 = scalar_lea.hbm %s959_s5, %s616_s12  ;;  %p708_p13 = pneg %p707_p12 }
  0x18   : > { %633 = vmatprep.subr.mxu0 %v767_v1  ;;  %642 = vmatprep.subr.mxu1 %v767_v1  ;;  %v447_v49 = vld [vmem:[%s957_s3] sm:$0xff]  ;;  %v434_v58 = vsub.s32 4, %v874_v7  ;;  %v439_v59 = vsub.s32 5, %v874_v7  ;;  %s711_s22 = scalar_lea.vmem %s710_s30, 256 }
  0x19   : > { %634 = vmatpush3.msra.mxu0 %v223_v3  ;;  %v229_v10 = vrot.slane %v880_v9, %v228_v8  ;;  %643 = vmatpush3.msra.mxu1 %v336_v18  ;;  %v324_v30 = vrot.slane %v880_v9, %v323_v27  ;;  %v329_v33 = vrot.slane %v880_v9, %v328_v28  ;;  %p713_p1 = scmp.lt.s32.totalorder %s711_s22, %s705_s25 }
  0x1a   : > { %635 = vmatprep.subr.mxu0 %v767_v1  ;;  %647 = vmatprep.subr.mxu1 %v767_v1  ;;  %v341_v42 = vrot.slane %v880_v9, %v340_v41  ;;  %v435_v61 = vrot.slane %v880_v9, %v434_v58  ;;  %v440_v0 = vrot.slane %v880_v9, %v439_v59 }
  0x1b   : > { %636 = vmatpush3.msra.mxu0 %v222_v4  ;;  %p714_p2 = por %p713_p1, %p712_p0 }
  0x1c   : > { %638 = vmatmul.mubr.msk.f32.vlgmr.msra.gmra.mxu0 %vm230_vm1, %v220_v5 }
  0x1d   : > { %p715_p3 = pnand %p714_p2, %p708_p13 }
  0xdc   : > { %v300_v11 = vpop.f32.mrf.mxu0 }
  0xdd   : > { %v301_v12 = vadd.f32 %v300_v11, %v229_v10  ;;  %v450_v10 = vsub.s32 6, %v874_v7 }
  0xde   : > { %v639_v13 = vpop.f32.mrf.mxu0 }
  0xdf   : > { %v305_v14 = vsel %vm304_vm2, %v301_v12, 0.0  ;;  %v308_v15 = vmul.f32 %v301_v12, %v301_v12  ;;  %v451_v11 = vrot.slane %v880_v9, %v450_v10 }
  0xe0   : > { %306 = vadd.xlane.f32.xlu0 %v305_v14 }
  0xe1   : > { %v309_v16 = vsel %vm304_vm2, %v308_v15, 0.0 }
  0xe4   : > { %310 = vadd.xlane.f32.xlu0 %v309_v16 }
 0x169   : > { %v307_v19 = vpop.xlane.xlu0 %306 }
 0x16a   : > { %v312_v20 = vmul.f32 0.0625, %v307_v19 }
 0x16c   : > { %v314_v22 = vmul.f32 %v312_v20, %v312_v20  ;;  %v317_v29 = vsub.f32 %v301_v12, %v312_v20 }
 0x16d   : > { %v311_v21 = vpop.xlane.xlu0 %310 }
 0x16e   : > { %v313_v23 = vmul.f32 0.0625, %v311_v21 }
 0x170   : > { %v315_v24 = vsub.f32 %v313_v23, %v314_v22 }
 0x172   : > { %v316_v25 = vmax.f32 %v315_v24, 0.0 }
 0x174   : > { %v318_v26 = vadd.f32 1e-05, %v316_v25 }
 0x176   : > { %693 = vrsqrt.f32 %v318_v26 }
 0x183   : > { %v694_v31 = vpop.eup %693 }
 0x184   : > { %v320_v32 = vmul.f32 %v694_v31, %v317_v29 }
 0x186   : > { %v325_v34 = vmul.f32 %v324_v30, %v320_v32 }
 0x188   : > { %v330_v35 = vadd.f32 %v329_v33, %v325_v34 }
 0x18a   : > { %v332_v36 = vmul.f32 0.70710677, %v330_v35  ;;  %v331_v38 = vmul.f32 0.5, %v330_v35 }
 0x18c   : > { %695 = verf.f32 %v332_v36 }
 0x199   : > { %v696_v37 = vpop.eup %695 }
 0x19a   : > { %v334_v39 = vadd.f32 1.0, %v696_v37 }
 0x19c   : > { %v335_v40 = vmul.f32 %v334_v39, %v331_v38 }
 0x19e   : > { %645 = vmatmul.mubr.msk.f32.vlgmr.msra.gmra.mxu1 %vm304_vm2, %v335_v40 }
 0x19f   : > { %649 = vmatprep.mubr.msk.f32.mxu1 %vm768_vm0, %v767_v1  ;;  %648 = vmatpush3.msra.mxu1 %v447_v49 }
 0x25e   : > { %v411_v43 = vpop.f32.mrf.mxu1 }
 0x25f   : > { %v412_v44 = vadd.f32 %v411_v43, %v341_v42 }
 0x260   : > { %v646_v45 = vpop.f32.mrf.mxu1 }
 0x261   : > { %v416_v46 = vsel %vm415_vm3, %v412_v44, 0.0  ;;  %v419_v47 = vmul.f32 %v412_v44, %v412_v44 }
 0x262   : > { %417 = vadd.xlane.f32.xlu1 %v416_v46 }
 0x263   : > { %v420_v48 = vsel %vm415_vm3, %v419_v47, 0.0 }
 0x266   : > { %421 = vadd.xlane.f32.xlu1 %v420_v48 }
 0x2eb   : > { %v418_v50 = vpop.xlane.xlu1 %417 }
 0x2ec   : > { %v423_v51 = vmul.f32 0.125, %v418_v50 }
 0x2ee   : > { %v425_v53 = vmul.f32 %v423_v51, %v423_v51  ;;  %v428_v60 = vsub.f32 %v412_v44, %v423_v51 }
 0x2ef   : > { %v422_v52 = vpop.xlane.xlu1 %421 }
 0x2f0   : > { %v424_v54 = vmul.f32 0.125, %v422_v52 }
 0x2f2   : > { %v426_v55 = vsub.f32 %v424_v54, %v425_v53 }
 0x2f4   : > { %v427_v56 = vmax.f32 %v426_v55, 0.0 }
 0x2f6   : > { %v429_v57 = vadd.f32 1e-05, %v427_v56 }
 0x2f8   : > { %697 = vrsqrt.f32 %v429_v57 }
 0x305   : > { %v698_v62 = vpop.eup %697 }
 0x306   : > { %v431_v63 = vmul.f32 %v698_v62, %v428_v60 }
 0x308   : > { %v436_v1 = vmul.f32 %v435_v61, %v431_v63 }
 0x30a   : > { %v441_v2 = vadd.f32 %v440_v0, %v436_v1 }
 0x30c   : > { %v443_v3 = vmul.f32 0.70710677, %v441_v2  ;;  %v442_v5 = vmul.f32 0.5, %v441_v2 }
 0x30e   : > { %699 = verf.f32 %v443_v3 }
 0x31b   : > { %v700_v4 = vpop.eup %699 }
 0x31c   : > { %v445_v6 = vadd.f32 1.0, %v700_v4 }
 0x31e   : > { %v446_v8 = vmul.f32 %v445_v6, %v442_v5 }
 0x320   : > { %650 = vmatmul.mubr.msk.f32.vlgmr.msra.gmra.mxu1 %vm415_vm3, %v446_v8 }
 0x3e0   : > { %v521_v12 = vpop.f32.mrf.mxu1 }
 0x3e1   : > { %v522_v13 = vadd.f32 %v521_v12, %v451_v11 }
 0x3e2   : > { %v651_v14 = vpop.f32.mrf.mxu1 }
 0x3e3   : > { %v614_v15 = vmul.f32 -1.442695, %v522_v13 }
 0x3e5   : > { %701 = vpow2.f32 %v614_v15 }
 0x3f2   : > { %v702_v16 = vpop.eup %701 }
 0x3f3   : > { %v528_v17 = vadd.f32 1.0, %v702_v16 }
 0x3f5   : > { %703 = vrcp.f32 %v528_v17 }
 0x402   : > { %v704_v7 = vpop.eup %703 }
 0x403   : > { %531 = vst [vmem:[%s215_s13] sm:$0xff] %v704_v7 }
 0x404   : > { %718 = shalt.err (!%p715_p3)
}
 0x405   : > { %s719_s6 = scalar_lea.hbm %s919_s17, 128  ;;  %s723_s9 = scalar_lea.hbm %s959_s5, 256 }
 0x406   : > { %p720_p4 = scmp.ne.s32.totalorder %s919_s17, %s719_s6  ;;  %p724_p9 = scmp.lt.s32.totalorder %s919_s17, %s959_s5 }
 0x407   : > { %p725_p10 = scmp.lt.s32.totalorder %s723_s9, %s719_s6 }
 0x408   : > { %p721_p7 = pnand %p720_p4, %p838_p5 }
 0x409   : > { %p726_p11 = por %p725_p10, %p724_p9 }
 0x40a   : > { %p722_p8 = pneg %p721_p7 }
 0x40c   : > { %p727_p12 = pnand %p726_p11, %p722_p8 }
 0x40e   : > { %730 = shalt.err (!%p727_p12)
}
 0x40f   : > { %652 = dma.vmem_to_hbm [thread:$0]  (%p838_p5), %s547_s14, 128, %s919_s17, %s533_s23  }
 0x410 PF: > { %p658_p13 = scmp.ge.s32.totalorder %s765_s21, 2  ;;  %s558_s12 = sand.u32 1, %s753_s18  }
 0x411   : > { %s559_s13 = scalar_lea.sflag [#allocation3], %s558_s12 }
 0x412   : > { %p655_p0 = pnand %p658_p13, %p842_p6 }
 0x414   : > { %p656_p1 = pneg %p655_p0 }
 0x416   : > { %748 = dma.done.wait (%p656_p1), %s559_s13, 128  }
 0x417   : > { %750 = vsyncadd (%p656_p1), %s559_s13, 4294967168  ;;  %p15_p2 = scmp.ge.s32.totalorder %s825_s24, 4   ;;  %s962_s18 = smov %s757_s19 }
 0x418   : > { %s963_s19 = smov %s761_s20  ;;  %s964_s20 = smov %s836_s27 }
 0x419   : > { %s965_s21 = smov %s825_s24  ;;  %17 = sbr.rel (!%p15_p2) target bundleno = 3 (0x3), region = 75 }
 0x41e   :  { %564 = vsyncpa [#allocation3], 1 }
 0x41f   :  { %566 = vsyncpa [#allocation3 + $0x1], 1 }

</bundles_post_ra>
